<compile_context>
chip_gen: v6e
topology: v6e:2x2x1
jax: 0.10.0
libtpu: 0.0.40
codegen_flags: <defaults>
</compile_context>

<pallas_src>
import jax
import jax.numpy as jnp
from jax.experimental import pallas as pl
from jax.experimental.pallas import tpu as pltpu


def _postprocess_kernel(hoi_ref, obj_ref, boxes_ref, scale_ref,
                        hoi_scores_ref, obj_scores_ref,
                        labels_ref, boxes_out_ref):
    # single-EUP sigmoid: 0.5 * (tanh(0.5x) + 1); no divide / abs / exp chain.
    def sigmoid(x):
        return 0.5 * (jnp.tanh(0.5 * x) + 1.0)

    # --- HOI scores: lane-dense (tb, Q*C_hoi) slab, cast-in-kernel ---
    hoi_scores_ref[...] = sigmoid(hoi_ref[...].astype(jnp.float32))

    # --- object scores + argmax over classes (excluding trailing "no object") ---
    obj = obj_ref[...].astype(jnp.float32)                 # (tb, Q, C_obj)
    obj_scores_ref[...] = sigmoid(obj)

    c_obj = obj.shape[-1]
    col = jax.lax.broadcasted_iota(jnp.int32, obj.shape, 2)
    # mask the last ("no object") class instead of slicing mid-lane-tile
    masked = jnp.where(col < c_obj - 1, obj, -jnp.inf)
    lmax = jnp.max(masked, axis=-1, keepdims=True)
    # first index achieving the max (torch.max tie-break semantics)
    labels_ref[...] = jnp.min(jnp.where(masked == lmax, col, c_obj), axis=-1)

    # --- cxcywh -> xyxy on the VPU, packed lane-dense (tb, 4, 2Q) ---
    # boxes rows = (cx, cy, w, h); lanes = 2Q (sub boxes ++ obj boxes).
    boxes = boxes_ref[...].astype(jnp.float32)              # (tb, 4, 2Q)
    cxy = boxes[:, 0:2, :]                                   # (tb, 2, 2Q)
    half = 0.5 * boxes[:, 2:4, :]                            # hoisted once
    scale = jnp.broadcast_to(scale_ref[...], cxy.shape)      # hoisted once
    boxes_out_ref[:, 0:2, :] = (cxy - half) * scale          # x1, y1
    boxes_out_ref[:, 2:4, :] = (cxy + half) * scale          # x2, y2


def post_process_hoi_triplet(outputs, target_sizes, subject_category_id=0):
    # no wrapper casts of the big tensors: kernel casts on the loaded vregs.
    hoi_logits = outputs['pred_hoi_logits']
    obj_logits = outputs['pred_obj_logits']
    sub_boxes = outputs['pred_sub_boxes']
    obj_boxes = outputs['pred_obj_boxes']
    B, Q, c_hoi = hoi_logits.shape
    c_obj = obj_logits.shape[2]
    assert B == target_sizes.shape[0]
    assert target_sizes.shape[1] == 2

    # glue (layout plumbing only):
    #   * HOI logits flattened to a lane-dense (B, Q*C_hoi) slab (free reshape)
    #   * sub ++ obj boxes packed into one lane-dense (B, 4, 2Q) slab
    hoi_flat = hoi_logits.reshape(B, Q * c_hoi)
    boxes_t = jnp.transpose(
        jnp.concatenate([sub_boxes, obj_boxes], axis=1), (0, 2, 1))  # (B, 4, 2Q)

    # per-image (img_w, img_h) scale shaped (B, 2, 1) for direct broadcast.
    ts = target_sizes.astype(jnp.float32)
    scale = jnp.stack([ts[:, 1], ts[:, 0]], axis=1)[:, :, None]      # (B, 2, 1)

    # VMEM-budget-driven batch block: one grid step unless the double-buffered
    # working set would exceed ~20 MiB (keeps v7x's 32 MiB scoped VMEM safe,
    # lets v5e/v6e use a single full-batch block).
    bytes_per_row = 4 * (2 * Q * c_hoi + 2 * Q * c_obj + 2 * 8 * Q + Q + 16)
    budget = 20 * 1024 * 1024
    tb = max(1, min(B, budget // (2 * bytes_per_row)))
    if tb < B:
        tb = min(B, max(8, (tb // 8) * 8))   # keep sublane-dim blocks aligned
    grid = (pl.cdiv(B, tb),)

    out_shapes = (
        jax.ShapeDtypeStruct((B, Q * c_hoi), jnp.float32),   # hoi scores (flat)
        jax.ShapeDtypeStruct((B, Q, c_obj), jnp.float32),    # obj scores
        jax.ShapeDtypeStruct((B, Q), jnp.int32),             # obj labels
        jax.ShapeDtypeStruct((B, 4, 2 * Q), jnp.float32),    # xyxy*scale, packed
    )
    grid_spec = pltpu.PrefetchScalarGridSpec(
        num_scalar_prefetch=0,
        grid=grid,
        in_specs=[
            pl.BlockSpec((tb, Q * c_hoi), lambda b: (b, 0)),
            pl.BlockSpec((tb, Q, c_obj), lambda b: (b, 0, 0)),
            pl.BlockSpec((tb, 4, 2 * Q), lambda b: (b, 0, 0)),
            pl.BlockSpec((tb, 2, 1), lambda b: (b, 0, 0)),
        ],
        out_specs=[
            pl.BlockSpec((tb, Q * c_hoi), lambda b: (b, 0)),
            pl.BlockSpec((tb, Q, c_obj), lambda b: (b, 0, 0)),
            pl.BlockSpec((tb, Q), lambda b: (b, 0)),
            pl.BlockSpec((tb, 4, 2 * Q), lambda b: (b, 0, 0)),
        ],
    )
    hoi_scores_flat, obj_scores, obj_labels, boxes_t_out = pl.pallas_call(
        _postprocess_kernel,
        out_shape=out_shapes,
        grid_spec=grid_spec,
        compiler_params=pltpu.CompilerParams(
            dimension_semantics=("parallel",),
            vmem_limit_bytes=32 * 1024 * 1024),
    )(hoi_flat, obj_logits, boxes_t, scale)

    # glue: unpack lane-dense kernel outputs + constant subject labels.
    hoi_scores = hoi_scores_flat.reshape(B, Q, c_hoi)
    sub_labels = jnp.full((B, Q), subject_category_id, jnp.int32)
    labels = jnp.concatenate([sub_labels, obj_labels], axis=1)        # (B, 2Q)
    boxes = jnp.transpose(boxes_t_out, (0, 2, 1))                     # (B, 2Q, 4)

    # glue: per-image result dicts, mirroring the torch module.
    # TODO(synk): the torch .to('cpu') transfers / python list-of-dicts packaging
    # have no kernel equivalent; done host-side here.
    results = []
    ids = jnp.arange(2 * Q)
    for index in range(B):
        results.append({
            'labels': labels[index],
            'boxes': boxes[index],
            'hoi_scores': hoi_scores[index],
            'obj_scores': obj_scores[index],
            'sub_ids': ids[:Q],
            'obj_ids': ids[Q:],
        })
    return results


def _reference(outputs, target_sizes, subject_category_id=0):
    """Pure-JAX reference mirroring the torch forward."""
    hoi_logits = outputs['pred_hoi_logits'].astype(jnp.float32)
    obj_logits = outputs['pred_obj_logits'].astype(jnp.float32)
    sub_boxes = outputs['pred_sub_boxes'].astype(jnp.float32)
    obj_boxes = outputs['pred_obj_boxes'].astype(jnp.float32)
    B, Q, _ = hoi_logits.shape

    hoi_scores = 1.0 / (1.0 + jnp.exp(-hoi_logits))
    obj_scores = 1.0 / (1.0 + jnp.exp(-obj_logits))
    obj_labels = jnp.argmax(jax.nn.softmax(obj_logits, -1)[..., :-1], -1)

    ts = target_sizes.astype(jnp.float32)
    scale = jnp.stack([ts[:, 1], ts[:, 0], ts[:, 1], ts[:, 0]], axis=1)[:, None, :]

    def to_xyxy(b):
        cx, cy, w, h = b[..., 0], b[..., 1], b[..., 2], b[..., 3]
        return jnp.stack([cx - 0.5 * w, cy - 0.5 * h,
                          cx + 0.5 * w, cy + 0.5 * h], axis=-1)

    sb = to_xyxy(sub_boxes) * scale
    ob = to_xyxy(obj_boxes) * scale

    results = []
    for i in range(B):
        sl = jnp.full((Q,), subject_category_id, jnp.int32)
        results.append({
            'labels': jnp.concatenate([sl, obj_labels[i].astype(jnp.int32)]),
            'boxes': jnp.concatenate([sb[i], ob[i]], axis=0),
            'hoi_scores': hoi_scores[i],
            'obj_scores': obj_scores[i],
            'sub_ids': jnp.arange(2 * Q)[:Q],
            'obj_ids': jnp.arange(2 * Q)[Q:],
        })
    return results


if __name__ == "__main__":
    import numpy as np

    B, Q = 2, 8           # batch, number of queries
    C_HOI = 16            # HOI (verb) classes
    C_OBJ = 12            # 11 object classes + 1 "no object"
    SUBJECT_CATEGORY_ID = 0

    key = jax.random.PRNGKey(0)
    k1, k2, k3, k4 = jax.random.split(key, 4)
    outputs = {
        'pred_hoi_logits': jax.random.normal(k1, (B, Q, C_HOI), jnp.float32),
        'pred_obj_logits': jax.random.normal(k2, (B, Q, C_OBJ), jnp.float32),
        'pred_sub_boxes': jax.random.uniform(k3, (B, Q, 4), jnp.float32,
                                             minval=0.1, maxval=0.9),
        'pred_obj_boxes': jax.random.uniform(k4, (B, Q, 4), jnp.float32,
                                             minval=0.1, maxval=0.9),
    }
    target_sizes = jnp.array([[480.0, 640.0], [320.0, 512.0]], jnp.float32)  # (h, w)

    results = post_process_hoi_triplet(outputs, target_sizes, SUBJECT_CATEGORY_ID)
    jax.block_until_ready(results[0]['boxes'])

    refs = _reference(outputs, target_sizes, SUBJECT_CATEGORY_ID)
    for got, ref in zip(results, refs):
        np.testing.assert_array_equal(np.asarray(got['labels']),
                                      np.asarray(ref['labels']))
        np.testing.assert_allclose(np.asarray(got['boxes']),
                                   np.asarray(ref['boxes']), rtol=1e-5, atol=1e-4)
        np.testing.assert_allclose(np.asarray(got['hoi_scores']),
                                   np.asarray(ref['hoi_scores']), rtol=1e-5, atol=1e-5)
        np.testing.assert_allclose(np.asarray(got['obj_scores']),
                                   np.asarray(ref['obj_scores']), rtol=1e-5, atol=1e-5)
        np.testing.assert_array_equal(np.asarray(got['sub_ids']),
                                      np.asarray(ref['sub_ids']))
        np.testing.assert_array_equal(np.asarray(got['obj_ids']),
                                      np.asarray(ref['obj_ids']))

    print("KERNEL_OK")
</pallas_src>

<mosaic_0001>
module attributes {stable_mosaic.version = 11 : i64} {
  func.func @_postprocess_kernel(%arg0: i32, %arg1: memref<2x128xf32, #tpu.memory_space<vmem>>, %arg2: memref<2x8x12xf32, #tpu.memory_space<vmem>>, %arg3: memref<2x4x16xf32, #tpu.memory_space<vmem>>, %arg4: memref<2x2x1xf32, #tpu.memory_space<vmem>>, %arg5: memref<2x128xf32, #tpu.memory_space<vmem>>, %arg6: memref<2x8x12xf32, #tpu.memory_space<vmem>>, %arg7: memref<2x8xi32, #tpu.memory_space<vmem>>, %arg8: memref<2x4x16xf32, #tpu.memory_space<vmem>>) attributes {dimension_semantics = [#tpu.dimension_semantics<parallel>], iteration_bounds = array<i64: 1>, scalar_prefetch = 0 : i64, scratch_operands = 0 : i64, tpu.core_type = #tpu.core_type<tc>, window_params = [{transform_indices = @transform_0, window_bounds = array<i64: 2, 128>}, {transform_indices = @transform_1, window_bounds = array<i64: 2, 8, 12>}, {transform_indices = @transform_2, window_bounds = array<i64: 2, 4, 16>}, {transform_indices = @transform_3, window_bounds = array<i64: 2, 2, 1>}, {transform_indices = @transform_4, window_bounds = array<i64: 2, 128>}, {transform_indices = @transform_5, window_bounds = array<i64: 2, 8, 12>}, {transform_indices = @transform_6, window_bounds = array<i64: 2, 8>}, {transform_indices = @transform_7, window_bounds = array<i64: 2, 4, 16>}]} {
    %c0 = arith.constant 0 : index
    %c0_0 = arith.constant 0 : index
    %0 = vector.load %arg1[%c0, %c0_0] : memref<2x128xf32, #tpu.memory_space<vmem>>, vector<2x128xf32>
    %cst = arith.constant 5.000000e-01 : f32
    %1 = vector.broadcast %cst : f32 to vector<2x128xf32>
    %2 = arith.mulf %1, %0 : vector<2x128xf32>
    %3 = math.tanh %2 : vector<2x128xf32>
    %cst_1 = arith.constant 1.000000e+00 : f32
    %4 = vector.broadcast %cst_1 : f32 to vector<2x128xf32>
    %5 = arith.addf %3, %4 : vector<2x128xf32>
    %cst_2 = arith.constant 5.000000e-01 : f32
    %6 = vector.broadcast %cst_2 : f32 to vector<2x128xf32>
    %7 = arith.mulf %6, %5 : vector<2x128xf32>
    %c0_3 = arith.constant 0 : index
    %c0_4 = arith.constant 0 : index
    %8 = vector.load %arg5[%c0_3, %c0_4] : memref<2x128xf32, #tpu.memory_space<vmem>>, vector<2x128xf32>
    tpu.vector_store %arg5[%c0_3, %c0_4], %7 {strides = array<i32>} : memref<2x128xf32, #tpu.memory_space<vmem>>, vector<2x128xf32>,
    %c0_5 = arith.constant 0 : index
    %c0_6 = arith.constant 0 : index
    %c0_7 = arith.constant 0 : index
    %9 = vector.load %arg2[%c0_5, %c0_6, %c0_7] : memref<2x8x12xf32, #tpu.memory_space<vmem>>, vector<2x8x12xf32>
    %cst_8 = arith.constant 5.000000e-01 : f32
    %10 = vector.broadcast %cst_8 : f32 to vector<2x8x12xf32>
    %11 = arith.mulf %10, %9 : vector<2x8x12xf32>
    %12 = math.tanh %11 : vector<2x8x12xf32>
    %cst_9 = arith.constant 1.000000e+00 : f32
    %13 = vector.broadcast %cst_9 : f32 to vector<2x8x12xf32>
    %14 = arith.addf %12, %13 : vector<2x8x12xf32>
    %cst_10 = arith.constant 5.000000e-01 : f32
    %15 = vector.broadcast %cst_10 : f32 to vector<2x8x12xf32>
    %16 = arith.mulf %15, %14 : vector<2x8x12xf32>
    %c0_11 = arith.constant 0 : index
    %c0_12 = arith.constant 0 : index
    %c0_13 = arith.constant 0 : index
    %17 = vector.load %arg6[%c0_11, %c0_12, %c0_13] : memref<2x8x12xf32, #tpu.memory_space<vmem>>, vector<2x8x12xf32>
    tpu.vector_store %arg6[%c0_11, %c0_12, %c0_13], %16 {strides = array<i32>} : memref<2x8x12xf32, #tpu.memory_space<vmem>>, vector<2x8x12xf32>,
    %18 = tpu.iota {dimensions = array<i32: 2>} : vector<2x8x12xi32>
    %c11_i32 = arith.constant 11 : i32
    %19 = vector.broadcast %c11_i32 : i32 to vector<2x8x12xi32>
    %20 = arith.cmpi slt, %18, %19 : vector<2x8x12xi32>
    %cst_14 = arith.constant 0xFF800000 : f32
    %21 = vector.broadcast %cst_14 : f32 to vector<2x8x12xf32>
    %22 = arith.select %20, %9, %21 : vector<2x8x12xi1>, vector<2x8x12xf32>
    %cst_15 = arith.constant dense<0xFF800000> : vector<2x8xf32>
    %23 = vector.multi_reduction <maximumf>, %22, %cst_15 [2] : vector<2x8x12xf32> to vector<2x8xf32>
    %24 = vector.shape_cast %23 : vector<2x8xf32> to vector<2x8x1xf32>
    %25 = vector.broadcast %24 : vector<2x8x1xf32> to vector<2x8x12xf32>
    %26 = arith.cmpf oeq, %22, %25 : vector<2x8x12xf32>
    %c12_i32 = arith.constant 12 : i32
    %27 = vector.broadcast %c12_i32 : i32 to vector<2x8x12xi32>
    %28 = arith.select %26, %18, %27 : vector<2x8x12xi1>, vector<2x8x12xi32>
    %cst_16 = arith.constant dense<2147483647> : vector<2x8xi32>
    %29 = vector.multi_reduction <minsi>, %28, %cst_16 [2] : vector<2x8x12xi32> to vector<2x8xi32>
    %c0_17 = arith.constant 0 : index
    %c0_18 = arith.constant 0 : index
    %30 = vector.load %arg7[%c0_17, %c0_18] : memref<2x8xi32, #tpu.memory_space<vmem>>, vector<2x8xi32>
    tpu.vector_store %arg7[%c0_17, %c0_18], %29 {strides = array<i32>} : memref<2x8xi32, #tpu.memory_space<vmem>>, vector<2x8xi32>,
    %c0_19 = arith.constant 0 : index
    %c0_20 = arith.constant 0 : index
    %c0_21 = arith.constant 0 : index
    %31 = vector.load %arg3[%c0_19, %c0_20, %c0_21] : memref<2x4x16xf32, #tpu.memory_space<vmem>>, vector<2x4x16xf32>
    %32 = vector.extract_strided_slice %31 {offsets = [0, 0, 0], sizes = [2, 2, 16], strides = [1, 1, 1]} : vector<2x4x16xf32> to vector<2x2x16xf32>
    %33 = vector.extract_strided_slice %31 {offsets = [0, 2, 0], sizes = [2, 2, 16], strides = [1, 1, 1]} : vector<2x4x16xf32> to vector<2x2x16xf32>
    %cst_22 = arith.constant 5.000000e-01 : f32
    %34 = vector.broadcast %cst_22 : f32 to vector<2x2x16xf32>
    %35 = arith.mulf %34, %33 : vector<2x2x16xf32>
    %c0_23 = arith.constant 0 : index
    %c0_24 = arith.constant 0 : index
    %c0_25 = arith.constant 0 : index
    %36 = vector.load %arg4[%c0_23, %c0_24, %c0_25] : memref<2x2x1xf32, #tpu.memory_space<vmem>>, vector<2x2x1xf32>
    %37 = vector.shape_cast %36 : vector<2x2x1xf32> to vector<2x2x1xf32>
    %38 = vector.broadcast %37 : vector<2x2x1xf32> to vector<2x2x16xf32>
    %39 = arith.subf %32, %35 : vector<2x2x16xf32>
    %40 = arith.mulf %39, %38 : vector<2x2x16xf32>
    %c0_26 = arith.constant 0 : index
    %c0_27 = arith.constant 0 : index
    %c0_28 = arith.constant 0 : index
    %41 = vector.load %arg8[%c0_26, %c0_27, %c0_28] : memref<2x4x16xf32, #tpu.memory_space<vmem>>, vector<2x2x16xf32>
    tpu.vector_store %arg8[%c0_26, %c0_27, %c0_28], %40 {strides = array<i32>} : memref<2x4x16xf32, #tpu.memory_space<vmem>>, vector<2x2x16xf32>,
    %42 = arith.addf %32, %35 : vector<2x2x16xf32>
    %43 = arith.mulf %42, %38 : vector<2x2x16xf32>
    %c0_29 = arith.constant 0 : index
    %c2 = arith.constant 2 : index
    %c0_30 = arith.constant 0 : index
    %44 = vector.load %arg8[%c0_29, %c2, %c0_30] : memref<2x4x16xf32, #tpu.memory_space<vmem>>, vector<2x2x16xf32>
    tpu.vector_store %arg8[%c0_29, %c2, %c0_30], %43 {strides = array<i32>} : memref<2x4x16xf32, #tpu.memory_space<vmem>>, vector<2x2x16xf32>,
    return
  }
  func.func @transform_0(%arg0: i32) -> (i32, i32) {
    %c0_i32 = arith.constant 0 : i32
    %c0_i32_0 = arith.constant 0 : i32
    return %arg0, %c0_i32 : i32, i32
  }
  func.func @transform_1(%arg0: i32) -> (i32, i32, i32) {
    %c0_i32 = arith.constant 0 : i32
    %c0_i32_0 = arith.constant 0 : i32
    %c0_i32_1 = arith.constant 0 : i32
    return %arg0, %c0_i32, %c0_i32_0 : i32, i32, i32
  }
  func.func @transform_2(%arg0: i32) -> (i32, i32, i32) {
    %c0_i32 = arith.constant 0 : i32
    %c0_i32_0 = arith.constant 0 : i32
    %c0_i32_1 = arith.constant 0 : i32
    return %arg0, %c0_i32, %c0_i32_0 : i32, i32, i32
  }
  func.func @transform_3(%arg0: i32) -> (i32, i32, i32) {
    %c0_i32 = arith.constant 0 : i32
    %c0_i32_0 = arith.constant 0 : i32
    %c0_i32_1 = arith.constant 0 : i32
    return %arg0, %c0_i32, %c0_i32_0 : i32, i32, i32
  }
  func.func @transform_4(%arg0: i32) -> (i32, i32) {
    %c0_i32 = arith.constant 0 : i32
    %c0_i32_0 = arith.constant 0 : i32
    return %arg0, %c0_i32 : i32, i32
  }
  func.func @transform_5(%arg0: i32) -> (i32, i32, i32) {
    %c0_i32 = arith.constant 0 : i32
    %c0_i32_0 = arith.constant 0 : i32
    %c0_i32_1 = arith.constant 0 : i32
    return %arg0, %c0_i32, %c0_i32_0 : i32, i32, i32
  }
  func.func @transform_6(%arg0: i32) -> (i32, i32) {
    %c0_i32 = arith.constant 0 : i32
    %c0_i32_0 = arith.constant 0 : i32
    return %arg0, %c0_i32 : i32, i32
  }
  func.func @transform_7(%arg0: i32) -> (i32, i32, i32) {
    %c0_i32 = arith.constant 0 : i32
    %c0_i32_0 = arith.constant 0 : i32
    %c0_i32_1 = arith.constant 0 : i32
    return %arg0, %c0_i32, %c0_i32_0 : i32, i32, i32
  }
}

</mosaic_0001>

<bundles_post_ra>
// kernel: tpu_custom_call.1
= control target key start
LH: loop header
LB: loop body
LE: loop exit
PB: predicated region body
PF: predicated region fallthrough
CT: control target
= control target key end

     0   :  { %13 = vsyncpa [#allocation3], 0  ;;  %s476_s0 = inlined_call_operand.hbm [shape: f32[2,128], index: 0, kind: input, shape index: {}]   ;;  %s477_s1 = inlined_call_operand.hbm [shape: f32[2,8,12], index: 1, kind: input, shape index: {}]   ;;  %s478_s2 = inlined_call_operand.vmem [shape: f32[2,4,16], index: 2, kind: input, shape index: {}]   ;;  %s479_s3 = inlined_call_operand.vmem [shape: f32[2,2,1], index: 3, kind: input, shape index: {}]   ;;  %s480_s4 = inlined_call_operand.hbm [shape: f32[2,128], index: 4, kind: output, shape index: {0}]   ;;  %s481_s5 = inlined_call_operand.hbm [shape: f32[2,8,12], index: 5, kind: output, shape index: {1}]   ;;  %s482_s6 = inlined_call_operand.hbm [shape: s32[2,8], index: 6, kind: output, shape index: {2}]   ;;  %s483_s7 = inlined_call_operand.hbm [shape: f32[2,4,16], index: 7, kind: output, shape index: {3}]  }
   0x1   :  { %14 = vsyncpa [#allocation6], 0 }
   0x2   :  { %15 = vsyncpa [#allocation4], 0 }
   0x3   :  { %16 = vsyncpa [#allocation9], 0 }
   0x4   :  { %17 = vsyncpa [#allocation12], 0  ;;  %s371_s24 = smov [#allocation2]   ;;  %s372_s26 = smov [#allocation5]  }
   0x5   :  { %s24_s25 = sshll.u32 %s371_s24, 4  ;;  %s33_s27 = sshll.u32 %s372_s26, 4  ;;  %s25_s25 = int_to_ptr.vmem [resolvable:$true] %s24_s25  ;;  %s34_s27 = int_to_ptr.vmem [resolvable:$true] %s33_s27 }
   0x6   :  { %s249_s28 = scalar_lea.vmem %s25_s25, 32  ;;  %p254_p1 = scmp.lt.s32.totalorder %s25_s25, %s25_s25 }
   0x7   :  { %p250_p0 = scmp.ne.s32.totalorder %s25_s25, %s249_s28  ;;  %p255_p2 = scmp.lt.s32.totalorder %s249_s28, %s249_s28 }
   0x9   :  { %p256_p3 = por %p255_p2, %p254_p1 }
   0xb   :  { %p257_p4 = pnand %p256_p3, %p250_p0 }
   0xd   :  { %260 = shalt.err (!%p257_p4)
}
   0xe   :  { %27 = dma.hbm_to_vmem [thread:$0]  %s476_s0, 32, %s25_s25, [#allocation3]  }
   0xf   :  { %s269_s8 = scalar_lea.vmem %s34_s27, 256  ;;  %p274_p6 = scmp.lt.s32.totalorder %s34_s27, %s34_s27 }
  0x10   :  { %p270_p5 = scmp.ne.s32.totalorder %s34_s27, %s269_s8  ;;  %p275_p7 = scmp.lt.s32.totalorder %s269_s8, %s269_s8 }
  0x12   :  { %p276_p8 = por %p275_p7, %p274_p6 }
  0x14   :  { %p277_p9 = pnand %p276_p8, %p270_p5 }
  0x16   :  { %280 = shalt.err (!%p277_p9)
}
  0x17   :  { %s373_s9 = smov 128   ;;  %s374_s10 = smov 8  }
  0x18   :  { %39 = dma.hbm_to_vmem [thread:$0]  %s477_s1, 256, %s34_s27, [#allocation6], %s373_s9, %s373_s9, %s374_s10  }
  0x19   :  { %361 = dma.done.wait [#allocation3], 32  }
  0x1a   :  { %362 = vsyncadd [#allocation3], 4294967264 }
  0x1b   :  { %363 = dma.done.wait [#allocation6], 256  }
  0x1c   :  { %364 = vsyncadd [#allocation6], 4294967040  ;;  %v69_v0 = vlaneseq  ;;  %vm66_vm1 = vcmask 97280   ;;  %v56_v2 = vld [vmem:[#allocation5] sm:$0xff]  ;;  %v57_v3 = vld [vmem:[#allocation5 + $0x8] sm:$0xff]  ;;  %v375_v22 = vmov 0  }
  0x1d   :  { %v58_v5 = vmul.f32 0.5, %v56_v2  ;;  %234 = vset.pattern.permute.xlu1 %v375_v22  ;;  %233 = vset.pattern.permute.xlu0 %v375_v22  ;;  %v59_v24 = vmul.f32 0.5, %v57_v3  ;;  %v50_v29 = vld [vmem:[#allocation2] sm:$0x3]  ;;  %v131_v37 = vld [vmem:[%s479_s3 + $0x2] sm:$0x3] }
  0x1e   :  { %v432_v1 = vand.u32 127, %v69_v0  ;;  %v51_v32 = vmul.f32 0.5, %v50_v29  ;;  %v130_v40 = vld [vmem:[%s479_s3] sm:$0x3]  ;;  %s376_s15 = smov [#allocation8]   ;;  %s377_s17 = smov [#allocation7]  }
  0x1f   :  { %235 = vtanh.f32 %v58_v5  ;;  %s176_s16 = sshll.u32 %s376_s15, 4  ;;  %s167_s18 = sshll.u32 %s377_s17, 4  ;;  %s177_s16 = int_to_ptr.vmem [resolvable:$true] %s176_s16  ;;  %s168_s18 = int_to_ptr.vmem [resolvable:$true] %s167_s18 }
  0x20   :  { %vm71_vm0 = vcmp.lt.s32.totalorder %v432_v1, 11  ;;  %237 = vtanh.f32 %v59_v24  ;;  %s281_s19 = scalar_lea.vmem %s177_s16, 256  ;;  %p286_p11 = scmp.lt.s32.totalorder %s177_s16, %s177_s16 }
  0x21   :  { %v72_v4 = vsel %vm71_vm0, %v56_v2, -inf  ;;  %v73_v6 = vsel %vm71_vm0, %v57_v3, -inf  ;;  %239 = vtanh.f32 %v51_v32  ;;  %p282_p10 = scmp.ne.s32.totalorder %s177_s16, %s281_s19  ;;  %p287_p12 = scmp.lt.s32.totalorder %s281_s19, %s281_s19 }
  0x22   :  { %v74_v7 = vsel %vm66_vm1, %v72_v4, -inf  ;;  %v77_v8 = vsel %vm66_vm1, %v73_v6, -inf }
  0x23   :  { %75 = vmax.xlane.f32.xlu0 %v74_v7  ;;  %p288_p13 = por %p287_p12, %p286_p11 }
  0x25   :  { %p289_p0 = pnand %p288_p13, %p282_p10 }
  0x27   :  { %78 = vmax.xlane.f32.xlu0 %v77_v8 }
  0x2c   :  { %v236_v9 = vpop.eup %235 }
  0x2d   :  { %v62_v10 = vadd.f32 1.0, %v236_v9  ;;  %v238_v34 = vpop.eup %237 }
  0x2e   :  { %v63_v35 = vadd.f32 1.0, %v238_v34  ;;  %v240_v36 = vpop.eup %239 }
  0x2f   :  { %v64_v11 = vmul.f32 0.5, %v62_v10  ;;  %v53_v39 = vadd.f32 1.0, %v240_v36 }
  0x30   :  { %v65_v38 = vmul.f32 0.5, %v63_v35 }
  0x31   :  { %67 = vst.msk [vmem:[#allocation8] sm:$0xff] %vm66_vm1, %v64_v11  ;;  %v54_v41 = vmul.f32 0.5, %v53_v39 }
  0x32   :  { %68 = vst.msk [vmem:[#allocation8 + $0x8] sm:$0xff] %vm66_vm1, %v65_v38 }
  0xac   :  { %v76_v12 = vpop.xlane.xlu0 %75 }
  0xad   :  { %vm80_vm2 = vcmp.eq.f32.partialorder %v72_v4, %v76_v12 }
  0xae   :  { %v82_v13 = vsel %vm80_vm2, %v432_v1, 12 }
  0xaf   :  { %v84_v14 = vsel %vm66_vm1, %v82_v13, 2147483647 }
  0xb0   :  { %v79_v15 = vpop.xlane.xlu0 %78  ;;  %v86_v16 = vshra.s32 %v84_v14, 16  ;;  %v85_v23 = vand.u32 65535, %v84_v14 }
  0xb1   :  { %vm81_vm3 = vcmp.eq.f32.partialorder %v73_v6, %v79_v15 }
  0xb2   :  { %v83_v17 = vsel %vm81_vm3, %v432_v1, 12  ;;  %v88_v18 = vcvt.s32.f32 %v86_v16  ;;  %v87_v26 = vcvt.s32.f32 %v85_v23 }
  0xb3   :  { %v99_v19 = vsel %vm66_vm1, %v83_v17, 2147483647 }
  0xb4   :  { %89 = vmin.xlane.f32.xlu1 %v88_v18  ;;  %v101_v20 = vshra.s32 %v99_v19, 16  ;;  %v100_v27 = vand.u32 65535, %v99_v19 }
  0xb6   :  { %v103_v21 = vcvt.s32.f32 %v101_v20  ;;  %v102_v31 = vcvt.s32.f32 %v100_v27 }
  0xb8   :  { %104 = vmin.xlane.f32.xlu1 %v103_v21 }
 0x13d   :  { %v90_v25 = vpop.xlane.xlu1 %89 }
 0x13e   :  { %vm91_vm4 = vcmp.eq.f32.partialorder %v88_v18, %v90_v25 }
 0x13f   :  { %v92_v28 = vsel %vm91_vm4, %v87_v26, inf }
 0x140   :  { %93 = vmin.xlane.f32.xlu0 %v92_v28 }
 0x141   :  { %v105_v30 = vpop.xlane.xlu1 %104 }
 0x142   :  { %vm106_vm5 = vcmp.eq.f32.partialorder %v103_v21, %v105_v30 }
 0x143   :  { %v107_v33 = vsel %vm106_vm5, %v102_v31, inf }
 0x144   :  { %108 = vmin.xlane.f32.xlu1 %v107_v33 }
 0x155   :  { %139 = vperm.xlu1 %234, %v131_v37  }
 0x156   :  { %292 = shalt.err (!%p289_p0)
}
 0x157   :  { %182 = dma.vmem_to_hbm [thread:$0]  %s177_s16, 256, %s481_s5, [#allocation9], %s373_s9, %s373_s9, %s374_s10   ;;  %134 = vperm.xlu0 %233, %v130_v40   ;;  %55 = vst [vmem:[#allocation7] sm:$0x3] %v54_v41 }
 0x158   :  { %s301_s21 = scalar_lea.vmem %s168_s18, 32  ;;  %p306_p2 = scmp.lt.s32.totalorder %s168_s18, %s168_s18 }
 0x159   :  { %p302_p1 = scmp.ne.s32.totalorder %s168_s18, %s301_s21  ;;  %p307_p3 = scmp.lt.s32.totalorder %s301_s21, %s301_s21 }
 0x15b   :  { %p308_p4 = por %p307_p3, %p306_p2 }
 0x15d   :  { %p309_p5 = pnand %p308_p4, %p302_p1 }
 0x15f   :  { %312 = shalt.err (!%p309_p5)
}
 0x160   :  { %170 = dma.vmem_to_hbm [thread:$0]  %s168_s18, 32, %s480_s4, [#allocation4]   ;;  %v127_v42 = vld [vmem:[%s478_s2 + $0x4] sm:$0xf]  ;;  %v126_v43 = vld [vmem:[%s478_s2] sm:$0xf]  ;;  %v96_v46 = vcvt.f32.s32 %v90_v25  ;;  %v111_v47 = vcvt.f32.s32 %v105_v30 }
 0x161   :  { %v129_v44 = vmul.f32 0.5, %v127_v42  ;;  %v128_v45 = vmul.f32 0.5, %v126_v43  ;;  %v115_v48 = vshrl.u32 %v69_v0, 7  ;;  %s378_s2 = smov [#allocation10]   ;;  %s379_s27 = smov [#allocation11]   ;;  %vm152_vm6 = vcmask 123904  }
 0x162   :  { %v97_v53 = vshll.u32 %v96_v46, 16  ;;  %v112_v54 = vshll.u32 %v111_v47, 16  ;;  %s189_s4 = sshll.u32 %s378_s2, 4  ;;  %s198_s28 = sshll.u32 %s379_s27, 4  ;;  %vm122_vm7 = vcmask 1041409   ;;  %vm124_vm8 = vcmask 58368   ;;  %s190_s4 = int_to_ptr.vmem [resolvable:$true] %s189_s4  ;;  %s199_s28 = int_to_ptr.vmem [resolvable:$true] %s198_s28 }
 0x163   :  { %v145_v51 = vrot.slane %v129_v44, 2  ;;  %v144_v52 = vrot.slane %v128_v45, 2  ;;  %v116_v55 = vsub.s32 %v432_v1, %v115_v48  ;;  %s321_s29 = scalar_lea.vmem %s190_s4, 32  ;;  %p326_p7 = scmp.lt.s32.totalorder %s190_s4, %s190_s4 }
 0x164   :  { %p322_p6 = scmp.ne.s32.totalorder %s190_s4, %s321_s29  ;;  %p327_p8 = scmp.lt.s32.totalorder %s321_s29, %s321_s29 }
 0x165   :  { %v149_v59 = vsub.f32 %v127_v42, %v145_v51  ;;  %v156_v60 = vadd.f32 %v145_v51, %v127_v42  ;;  %v148_v61 = vsub.f32 %v126_v43, %v144_v52  ;;  %v155_v62 = vadd.f32 %v144_v52, %v126_v43 }
 0x166   :  { %p328_p9 = por %p327_p8, %p326_p7 }
 0x168   :  { %p329_p10 = pnand %p328_p9, %p322_p6 }
 0x1c9   :  { %v94_v49 = vpop.xlane.xlu0 %93 }
 0x1ca   :  { %v95_v50 = vcvt.f32.s32 %v94_v49 }
 0x1cc   :  { %v98_v56 = vadd.s32 %v97_v53, %v95_v50 }
 0x1cd   :  { %v109_v57 = vpop.xlane.xlu1 %108 }
 0x1ce   :  { %v110_v58 = vcvt.f32.s32 %v109_v57  ;;  %v117_v0 = vrot.slane %v98_v56, %v116_v55 }
 0x1d0   :  { %v113_v63 = vadd.s32 %v112_v54, %v110_v58 }
 0x1d1   :  { %v140_v2 = vpop.permute.xlu1 %139 }
 0x1d2   :  { %v135_v3 = vpop.permute.xlu0 %134  ;;  %v121_v4 = vrot.slane %v113_v63, %v116_v55  ;;  %v151_v1 = vmul.f32 %v149_v59, %v140_v2  ;;  %v158_v5 = vmul.f32 %v156_v60, %v140_v2 }
 0x1d3   :  { %v150_v6 = vmul.f32 %v148_v61, %v135_v3  ;;  %v157_v7 = vmul.f32 %v155_v62, %v135_v3 }
 0x1d4   :  { %154 = vst.msk [vmem:[#allocation11 + $0x4] sm:$0x3] %vm152_vm6, %v151_v1  ;;  %160 = vst.msk [vmem:[#allocation11 + $0x6] sm:$0x3] %vm152_vm6, %v158_v5  ;;  %v123_v8 = vsel %vm122_vm7, %v121_v4, %v117_v0 }
 0x1d5   :  { %153 = vst.msk [vmem:[#allocation11] sm:$0x3] %vm152_vm6, %v150_v6  ;;  %159 = vst.msk [vmem:[#allocation11 + $0x2] sm:$0x3] %vm152_vm6, %v157_v7 }
 0x1d6   :  { %125 = vst.msk [vmem:[#allocation10] sm:$0x3] %vm124_vm8, %v123_v8 }
 0x1d7   :  { %332 = shalt.err (!%p329_p10)
}
 0x1d8   :  { %192 = dma.vmem_to_hbm [thread:$0]  %s190_s4, 32, %s482_s6, [#allocation9]  }
 0x1d9   :  { %s341_s9 = scalar_lea.vmem %s199_s28, 128  ;;  %p346_p12 = scmp.lt.s32.totalorder %s199_s28, %s199_s28 }
 0x1da   :  { %p342_p11 = scmp.ne.s32.totalorder %s199_s28, %s341_s9  ;;  %p347_p13 = scmp.lt.s32.totalorder %s341_s9, %s341_s9 }
 0x1dc   :  { %p348_p0 = por %p347_p13, %p346_p12 }
 0x1de   :  { %p349_p1 = pnand %p348_p0, %p342_p11 }
 0x1e0   :  { %352 = shalt.err (!%p349_p1)
}
 0x1e1   :  { %s380_s10 = smov 64   ;;  %s381_s11 = smov 4  }
 0x1e2   :  { %204 = dma.vmem_to_hbm [thread:$0]  %s199_s28, 128, %s483_s7, [#allocation12], %s380_s10, %s380_s10, %s381_s11  }
 0x1e3   :  { %365 = dma.done.wait [#allocation4], 32  }
 0x1e4   :  { %366 = vsyncadd [#allocation4], 4294967264 }
 0x1e5   :  { %367 = dma.done.wait [#allocation9], 288  }
 0x1e6   :  { %368 = vsyncadd [#allocation9], 4294967008 }
 0x1e7   :  { %369 = dma.done.wait [#allocation12], 128  }
 0x1e8   :  { %370 = vsyncadd [#allocation12], 4294967168 }
 0x1e9   :  { %217 = vsyncpa [#allocation3], 1 }
 0x1ea   :  { %218 = vsyncpa [#allocation6], 1 }
 0x1eb   :  { %219 = vsyncpa [#allocation4], 1 }
 0x1ec   :  { %220 = vsyncpa [#allocation9], 1 }
 0x1ed   :  { %221 = vsyncpa [#allocation12], 1 }

</bundles_post_ra>
